<compile_context>
chip_gen: v5e
topology: v5e:2x2
jax: 0.10.0
libtpu: 0.0.40
codegen_flags: <defaults>
</compile_context>

<pallas_src>
import functools

import jax
import jax.numpy as jnp
import numpy as np
from jax.experimental import pallas as pl
from jax.experimental.pallas import tpu as pltpu


COMPUTE_DTYPE = jnp.bfloat16               # MXU fast path on v5e/v6e/v7x
VMEM_LIMIT_BYTES = 48 * 1024 * 1024        # < 64 MiB physical on v7x, fine on v5e/v6e


def _round_up(x, m):
    return ((x + m - 1) // m) * m


def _choose_tile(dim, pref, align):
    """Tile = min(pref, round_up(dim, align)); caller pads dim to a multiple."""
    return min(pref, _round_up(dim, align))


# ----------------------------------------------------------------------------
# Tiled, K-accumulating linear kernel:  y = x @ W + b   (W stored as [in, out])
# ----------------------------------------------------------------------------
def _linear_kernel(x_ref, w_ref, b_ref, o_ref, acc_ref):
    @pl.when(pl.program_id(2) == 0)
    def _():
        acc_ref[...] = jnp.zeros_like(acc_ref)

    acc_ref[...] += jnp.dot(x_ref[...], w_ref[...],
                            preferred_element_type=jnp.float32)

    @pl.when(pl.program_id(2) == pl.num_programs(2) - 1)
    def _():
        o_ref[...] = (acc_ref[...] + b_ref[...].astype(jnp.float32)).astype(o_ref.dtype)


def linear_pallas(x2d, w, b, *, out_dtype=None,
                  tm_pref=1024, tn_pref=512, tk_pref=512):
    M, K = x2d.shape
    K2, N = w.shape
    assert K == K2
    out_dtype = out_dtype or x2d.dtype

    tm = _choose_tile(M, tm_pref, 8)
    tn = _choose_tile(N, tn_pref, 128)
    tk = _choose_tile(K, tk_pref, 128)
    Mp, Np, Kp = _round_up(M, tm), _round_up(N, tn), _round_up(K, tk)

    # Pad to tile multiples (zeros don't affect the matmul; pad sliced off below).
    if (Mp, Kp) != (M, K):
        x2d = jnp.pad(x2d, ((0, Mp - M), (0, Kp - K)))
    if (Kp, Np) != (K, N):
        w = jnp.pad(w, ((0, Kp - K), (0, Np - N)))
    b2 = b.reshape(1, N)
    if Np != N:
        b2 = jnp.pad(b2, ((0, 0), (0, Np - N)))

    grid = (Mp // tm, Np // tn, Kp // tk)

    out = pl.pallas_call(
        _linear_kernel,
        out_shape=jax.ShapeDtypeStruct((Mp, Np), out_dtype),
        grid_spec=pltpu.PrefetchScalarGridSpec(
            num_scalar_prefetch=0,
            grid=grid,
            in_specs=[
                pl.BlockSpec((tm, tk), lambda i, j, k: (i, k)),
                pl.BlockSpec((tk, tn), lambda i, j, k: (k, j)),
                pl.BlockSpec((1, tn), lambda i, j, k: (0, j)),
            ],
            out_specs=pl.BlockSpec((tm, tn), lambda i, j, k: (i, j)),
            scratch_shapes=[pltpu.VMEM((tm, tn), jnp.float32)],
        ),
        compiler_params=pltpu.CompilerParams(
            dimension_semantics=("parallel", "parallel", "arbitrary"),
            vmem_limit_bytes=VMEM_LIMIT_BYTES,
        ),
    )(x2d, w, b2)

    if (Mp, Np) != (M, N):
        out = out[:M, :N]
    return out


# ----------------------------------------------------------------------------
# Attention kernel: one program per (batch, query-tile), all heads inside.
#   * kv_ref is one lane-dense [Na, 2C] slab (k columns first, then v).
#   * LN(k) is computed ONCE per batch (program_id(1)==0) into kn_scratch and
#     reused across query tiles.
#   * Per head: optional LN(q) (softmax scale pre-folded into the affine),
#     softmax(q k^T) v with bf16 matmuls / f32 accumulation, per-head store.
# ----------------------------------------------------------------------------
def _attn_kernel(q_ref, kv_ref, qw_ref, qb_ref, kw_ref, kb_ref, o_ref, *scratch,
                 num_heads, head_dim, eps_q, eps_k, qk_norm):
    hd = head_dim
    C = num_heads * hd

    def _ln(t, w, b, eps):
        mu = jnp.mean(t, axis=-1, keepdims=True)
        var = jnp.mean((t - mu) ** 2, axis=-1, keepdims=True)
        return (t - mu) * jax.lax.rsqrt(var + eps) * w + b

    if qk_norm:
        kn_ref = scratch[0]

        @pl.when(pl.program_id(1) == 0)
        def _():
            kw = kw_ref[...]
            kb = kb_ref[...]
            for h in range(num_heads):
                sl = slice(h * hd, (h + 1) * hd)
                k_h = kv_ref[0, :, sl].astype(jnp.float32)          # [Na, hd]
                kn_ref[:, sl] = _ln(k_h, kw, kb, eps_k).astype(kn_ref.dtype)

    for h in range(num_heads):
        sl = slice(h * hd, (h + 1) * hd)
        vsl = slice(C + h * hd, C + (h + 1) * hd)

        if qk_norm:
            # softmax scale is pre-folded into qw/qb by the wrapper
            q_h = _ln(q_ref[0, :, sl].astype(jnp.float32),
                      qw_ref[...], qb_ref[...], eps_q).astype(COMPUTE_DTYPE)
            k_h = kn_ref[:, sl].astype(COMPUTE_DTYPE)
        else:
            # softmax scale is pre-folded into q_w/q_b by the wrapper
            q_h = q_ref[0, :, sl].astype(COMPUTE_DTYPE)
            k_h = kv_ref[0, :, sl].astype(COMPUTE_DTYPE)
        v_h = kv_ref[0, :, vsl].astype(COMPUTE_DTYPE)

        # q k^T via dot_general contracting the last dims (no explicit transpose)
        s = jax.lax.dot_general(
            q_h, k_h,
            dimension_numbers=(((1,), (1,)), ((), ())),
            preferred_element_type=jnp.float32)                     # [tq, Na]

        m = jnp.max(s, axis=-1, keepdims=True)
        p = jnp.exp(s - m)
        denom = jnp.sum(p, axis=-1, keepdims=True)
        o_h = jnp.dot(p.astype(COMPUTE_DTYPE), v_h,
                      preferred_element_type=jnp.float32)           # [tq, hd]
        o_h = o_h * pl.reciprocal(denom, approx=True)
        o_ref[0, :, sl] = o_h.astype(o_ref.dtype)


def attention_pallas(q, kv, qn_w, qn_b, kn_w, kn_b, *, num_heads, head_dim,
                     eps_q, eps_k, qk_norm, out_dtype=None, tq_pref=512):
    B, N, C = q.shape
    _, Na, C2 = kv.shape
    assert C2 == 2 * C
    out_dtype = out_dtype or q.dtype

    tq = _choose_tile(N, tq_pref, 8)
    Npad = _round_up(N, tq)
    if Npad != N:
        q = jnp.pad(q, ((0, 0), (0, Npad - N), (0, 0)))

    kern = functools.partial(
        _attn_kernel, num_heads=num_heads, head_dim=head_dim,
        eps_q=eps_q, eps_k=eps_k, qk_norm=qk_norm)

    scratch_shapes = ([pltpu.VMEM((Na, C), COMPUTE_DTYPE)] if qk_norm else [])

    out = pl.pallas_call(
        kern,
        out_shape=jax.ShapeDtypeStruct((B, Npad, C), out_dtype),
        grid_spec=pltpu.PrefetchScalarGridSpec(
            num_scalar_prefetch=0,
            grid=(B, Npad // tq),
            in_specs=[
                pl.BlockSpec((1, tq, C), lambda b, qi: (b, qi, 0)),
                pl.BlockSpec((1, Na, 2 * C), lambda b, qi: (b, 0, 0)),
                pl.BlockSpec((1, head_dim), lambda b, qi: (0, 0)),
                pl.BlockSpec((1, head_dim), lambda b, qi: (0, 0)),
                pl.BlockSpec((1, head_dim), lambda b, qi: (0, 0)),
                pl.BlockSpec((1, head_dim), lambda b, qi: (0, 0)),
            ],
            out_specs=pl.BlockSpec((1, tq, C), lambda b, qi: (b, qi, 0)),
            scratch_shapes=scratch_shapes,
        ),
        compiler_params=pltpu.CompilerParams(
            # axis 1 must stay "arbitrary": the LN(k) scratch is filled at qi==0
            # and reused by all later qi of the same batch on the same core.
            dimension_semantics=("parallel", "arbitrary"),
            vmem_limit_bytes=VMEM_LIMIT_BYTES,
        ),
    )(q, kv, qn_w, qn_b, kn_w, kn_b)

    if Npad != N:
        out = out[:, :N, :]
    return out


# ----------------------------------------------------------------------------
# Module parameters + forward
# ----------------------------------------------------------------------------
def make_params(key, dim, enc_dim, num_heads, qkv_bias=True):
    head_dim = dim // num_heads
    ks = jax.random.split(key, 8)
    scale_q = 1.0 / np.sqrt(dim)
    scale_e = 1.0 / np.sqrt(enc_dim)
    params = dict(
        # weights stored as [in, out] (transposed nn.Linear)
        q_w=jax.random.normal(ks[0], (dim, dim), jnp.float32) * scale_q,
        q_b=(jax.random.normal(ks[1], (dim,), jnp.float32) * 0.02
             if qkv_bias else jnp.zeros((dim,), jnp.float32)),
        kv_w=jax.random.normal(ks[2], (enc_dim, 2 * dim), jnp.float32) * scale_e,
        kv_b=(jax.random.normal(ks[3], (2 * dim,), jnp.float32) * 0.02
              if qkv_bias else jnp.zeros((2 * dim,), jnp.float32)),
        proj_w=jax.random.normal(ks[4], (dim, dim), jnp.float32) * scale_q,
        proj_b=jax.random.normal(ks[5], (dim,), jnp.float32) * 0.02,
        # LayerNorm params over head_dim (q_norm uses eps=1e-6, add_k_norm default 1e-5)
        qn_w=jnp.ones((head_dim,), jnp.float32)
            + 0.1 * jax.random.normal(ks[6], (head_dim,), jnp.float32),
        qn_b=0.02 * jax.random.normal(ks[7], (head_dim,), jnp.float32),
        kn_w=jnp.ones((head_dim,), jnp.float32),
        kn_b=jnp.zeros((head_dim,), jnp.float32),
    )
    return params


def single_stream_attention_forward(params, x, encoder_hidden_states, shape,
                                    *, num_heads, qk_norm=True,
                                    eps_q=1e-6, eps_k=1e-5):
    N_t, N_h, N_w = shape
    B0, L, C = x.shape
    S = L // N_t
    H = num_heads
    hd = C // H
    scale = hd ** (-0.5)
    out_dtype = x.dtype

    # 'B (N_t S) C -> (B N_t) S C'  (pure contiguous reshape)
    xr = x.reshape(B0 * N_t, S, C)
    B, N, _ = xr.shape

    enc = encoder_hidden_states
    _, N_a, C_enc = enc.shape

    # Fold the softmax scale into the q path so the attention kernel never
    # multiplies by scale explicitly.
    if qk_norm:
        q_w_eff = params["q_w"]
        q_b_eff = params["q_b"]
        qn_w = (params["qn_w"] * scale).reshape(1, hd)
        qn_b = (params["qn_b"] * scale).reshape(1, hd)
    else:
        q_w_eff = params["q_w"] * scale
        q_b_eff = params["q_b"] * scale
        qn_w = params["qn_w"].reshape(1, hd)   # unused in the kernel
        qn_b = params["qn_b"].reshape(1, hd)
    kn_w = params["kn_w"].reshape(1, hd)
    kn_b = params["kn_b"].reshape(1, hd)

    # bf16 operands for the weight-streaming matmuls (f32 accumulation in-kernel)
    q_w = q_w_eff.astype(COMPUTE_DTYPE)
    kv_w = params["kv_w"].astype(COMPUTE_DTYPE)
    proj_w = params["proj_w"].astype(COMPUTE_DTYPE)

    x2 = xr.reshape(B * N, C).astype(COMPUTE_DTYPE)
    e2 = enc.reshape(B * N_a, C_enc).astype(COMPUTE_DTYPE)

    # q projection -> [B, N, C]   (heads are contiguous hd-wide column chunks)
    q = linear_pallas(x2, q_w, q_b_eff, out_dtype=COMPUTE_DTYPE).reshape(B, N, C)

    # fused k/v projection -> [B, Na, 2C]  (k columns first, then v; matches the
    # PyTorch [2, H, hd] column ordering of kv_linear)
    kv = linear_pallas(e2, kv_w, params["kv_b"],
                       out_dtype=COMPUTE_DTYPE).reshape(B, N_a, 2 * C)

    # attention (qk LayerNorm + softmax fused into the kernel), lane-dense [B, N, C] out
    o = attention_pallas(q, kv, qn_w, qn_b, kn_w, kn_b,
                         num_heads=H, head_dim=hd,
                         eps_q=eps_q, eps_k=eps_k, qk_norm=qk_norm,
                         out_dtype=COMPUTE_DTYPE)

    # output projection (attn_drop / proj_drop are identity in eval mode)
    out = linear_pallas(o.reshape(B * N, C), proj_w, params["proj_b"],
                        out_dtype=out_dtype)

    # '(B N_t) S C -> B (N_t S) C'
    return out.reshape(B0, N_t * S, C)


# ----------------------------------------------------------------------------
# Pure-JAX f32 reference (for a correctness sanity check)
# ----------------------------------------------------------------------------
def reference_forward(params, x, enc, shape, *, num_heads, qk_norm=True,
                      eps_q=1e-6, eps_k=1e-5):
    N_t, _, _ = shape
    B0, L, C = x.shape
    S = L // N_t
    H = num_heads
    hd = C // H
    scale = hd ** (-0.5)

    x = x.reshape(B0 * N_t, S, C)
    B, N, _ = x.shape
    _, N_a, C_enc = enc.shape

    q = x @ params["q_w"] + params["q_b"]
    q = q.reshape(B, N, H, hd).transpose(0, 2, 1, 3)
    kv = enc @ params["kv_w"] + params["kv_b"]
    kv = kv.reshape(B, N_a, 2, H, hd).transpose(2, 0, 3, 1, 4)
    k, v = kv[0], kv[1]

    def ln(t, w, b, eps):
        mu = jnp.mean(t, axis=-1, keepdims=True)
        var = jnp.mean((t - mu) ** 2, axis=-1, keepdims=True)
        return (t - mu) * jax.lax.rsqrt(var + eps) * w + b

    if qk_norm:
        q = ln(q, params["qn_w"], params["qn_b"], eps_q)
        k = ln(k, params["kn_w"], params["kn_b"], eps_k)

    s = jnp.einsum("bhnd,bhmd->bhnm", q, k) * scale
    p = jax.nn.softmax(s, axis=-1)
    o = jnp.einsum("bhnm,bhmd->bhnd", p, v)
    o = o.transpose(0, 2, 1, 3).reshape(B, N, C)
    out = o @ params["proj_w"] + params["proj_b"]
    return out.reshape(B0, N_t * S, C)


if __name__ == "__main__":
    # small shapes consistent with the module
    dim = 32
    enc_dim = 16
    num_heads = 4
    B0 = 2
    N_t, N_h, N_w = 2, 4, 2          # S = N_h * N_w = 8
    S = N_h * N_w
    N_a = 8

    key = jax.random.PRNGKey(0)
    kx, ke, kp = jax.random.split(key, 3)
    x = jax.random.normal(kx, (B0, N_t * S, dim), jnp.float32)
    encoder_hidden_states = jax.random.normal(ke, (B0 * N_t, N_a, enc_dim), jnp.float32)
    params = make_params(kp, dim, enc_dim, num_heads, qkv_bias=True)

    out = single_stream_attention_forward(
        params, x, encoder_hidden_states, (N_t, N_h, N_w), num_heads=num_heads)
    out = jax.block_until_ready(out)

    ref = reference_forward(
        params, x, encoder_hidden_states, (N_t, N_h, N_w), num_heads=num_heads)

    # bf16 matmul operands (f32 accumulation) + approximate softmax reciprocal
    # => relaxed tolerance vs the f32 reference.
    np.testing.assert_allclose(np.asarray(out, dtype=np.float32), np.asarray(ref),
                               rtol=5e-2, atol=5e-2)

    assert out.shape == (B0, N_t * S, dim)
    print("KERNEL_OK")
</pallas_src>

<mosaic_0001>
module attributes {stable_mosaic.version = 11 : i64} {
  func.func @_linear_kernel(%arg0: i32, %arg1: i32, %arg2: i32, %arg3: memref<32x128xbf16, #tpu.memory_space<vmem>>, %arg4: memref<128x128xbf16, #tpu.memory_space<vmem>>, %arg5: memref<1x128xf32, #tpu.memory_space<vmem>>, %arg6: memref<32x128xbf16, #tpu.memory_space<vmem>>, %arg7: memref<32x128xf32, #tpu.memory_space<vmem>>) attributes {dimension_semantics = [#tpu.dimension_semantics<parallel>, #tpu.dimension_semantics<parallel>, #tpu.dimension_semantics<arbitrary>], iteration_bounds = array<i64: 1, 1, 1>, scalar_prefetch = 0 : i64, scratch_operands = 1 : i64, tpu.core_type = #tpu.core_type<tc>, window_params = [{transform_indices = @transform_0, window_bounds = array<i64: 32, 128>}, {transform_indices = @transform_1, window_bounds = array<i64: 128, 128>}, {transform_indices = @transform_2, window_bounds = array<i64: 1, 128>}, {transform_indices = @transform_3, window_bounds = array<i64: 32, 128>}]} {
    %c0_i32 = arith.constant 0 : i32
    %0 = arith.cmpi eq, %arg2, %c0_i32 : i32
    %1 = arith.extui %0 : i1 to i32
    %c0_i32_0 = arith.constant 0 : i32
    %2 = arith.cmpi ne, %1, %c0_i32_0 : i32
    scf.if %2 {
      %cst_10 = arith.constant 0.000000e+00 : f32
      %12 = vector.broadcast %cst_10 : f32 to vector<32x128xf32>
      %c0_11 = arith.constant 0 : index
      %c0_12 = arith.constant 0 : index
      %13 = vector.load %arg7[%c0_11, %c0_12] : memref<32x128xf32, #tpu.memory_space<vmem>>, vector<32x128xf32>
      tpu.vector_store %arg7[%c0_11, %c0_12], %12 {strides = array<i32>} : memref<32x128xf32, #tpu.memory_space<vmem>>, vector<32x128xf32>,
    } else {
    }
    %c0 = arith.constant 0 : index
    %c0_1 = arith.constant 0 : index
    %3 = vector.load %arg7[%c0, %c0_1] : memref<32x128xf32, #tpu.memory_space<vmem>>, vector<32x128xf32>
    %c0_2 = arith.constant 0 : index
    %c0_3 = arith.constant 0 : index
    %4 = vector.load %arg3[%c0_2, %c0_3] : memref<32x128xbf16, #tpu.memory_space<vmem>>, vector<32x128xbf16>
    %c0_4 = arith.constant 0 : index
    %c0_5 = arith.constant 0 : index
    %5 = vector.load %arg4[%c0_4, %c0_5] : memref<128x128xbf16, #tpu.memory_space<vmem>>, vector<128x128xbf16>
    %cst = arith.constant dense<0.000000e+00> : vector<32x128xf32>
    %6 = tpu.matmul %4, %5, %cst {dimension_numbers = #tpu.dot_dimension_numbers<[1], [0], [0], [1], [0, 0, 1, 1], [], []>} : vector<32x128xbf16>, vector<128x128xbf16>, vector<32x128xf32> -> vector<32x128xf32>
    %7 = arith.addf %3, %6 : vector<32x128xf32>
    %c0_6 = arith.constant 0 : index
    %c0_7 = arith.constant 0 : index
    %8 = vector.load %arg7[%c0_6, %c0_7] : memref<32x128xf32, #tpu.memory_space<vmem>>, vector<32x128xf32>
    tpu.vector_store %arg7[%c0_6, %c0_7], %7 {strides = array<i32>} : memref<32x128xf32, #tpu.memory_space<vmem>>, vector<32x128xf32>,
    %c0_i32_8 = arith.constant 0 : i32
    %9 = arith.cmpi eq, %arg2, %c0_i32_8 : i32
    %10 = arith.extui %9 : i1 to i32
    %c0_i32_9 = arith.constant 0 : i32
    %11 = arith.cmpi ne, %10, %c0_i32_9 : i32
    scf.if %11 {
      %c0_10 = arith.constant 0 : index
      %c0_11 = arith.constant 0 : index
      %12 = vector.load %arg7[%c0_10, %c0_11] : memref<32x128xf32, #tpu.memory_space<vmem>>, vector<32x128xf32>
      %c0_12 = arith.constant 0 : index
      %c0_13 = arith.constant 0 : index
      %13 = vector.load %arg5[%c0_12, %c0_13] : memref<1x128xf32, #tpu.memory_space<vmem>>, vector<1x128xf32>
      %14 = vector.broadcast %13 : vector<1x128xf32> to vector<32x128xf32>
      %15 = arith.addf %12, %14 : vector<32x128xf32>
      %16 = arith.truncf %15 : vector<32x128xf32> to vector<32x128xbf16>
      %c0_14 = arith.constant 0 : index
      %c0_15 = arith.constant 0 : index
      %17 = vector.load %arg6[%c0_14, %c0_15] : memref<32x128xbf16, #tpu.memory_space<vmem>>, vector<32x128xbf16>
      tpu.vector_store %arg6[%c0_14, %c0_15], %16 {strides = array<i32>} : memref<32x128xbf16, #tpu.memory_space<vmem>>, vector<32x128xbf16>,
    } else {
    }
    return
  }
  func.func @transform_0(%arg0: i32, %arg1: i32, %arg2: i32) -> (i32, i32) {
    %c0_i32 = arith.constant 0 : i32
    return %arg0, %arg2 : i32, i32
  }
  func.func @transform_1(%arg0: i32, %arg1: i32, %arg2: i32) -> (i32, i32) {
    %c0_i32 = arith.constant 0 : i32
    return %arg2, %arg1 : i32, i32
  }
  func.func @transform_2(%arg0: i32, %arg1: i32, %arg2: i32) -> (i32, i32) {
    %c0_i32 = arith.constant 0 : i32
    %c0_i32_0 = arith.constant 0 : i32
    return %c0_i32, %arg1 : i32, i32
  }
  func.func @transform_3(%arg0: i32, %arg1: i32, %arg2: i32) -> (i32, i32) {
    %c0_i32 = arith.constant 0 : i32
    return %arg0, %arg1 : i32, i32
  }
}

</mosaic_0001>

<bundles_post_ra>
// kernel: tpu_custom_call.1
= control target key start
LH: loop header
LB: loop body
LE: loop exit
PB: predicated region body
PF: predicated region fallthrough
CT: control target
= control target key end

     0   :  { %8 = vsyncpa [#allocation4], 0  ;;  %s408_s0 = inlined_call_operand.hbm [shape: bf16[32,128], index: 0, kind: input, shape index: {}]   ;;  %s409_s1 = inlined_call_operand.hbm [shape: bf16[128,128], index: 1, kind: input, shape index: {}]   ;;  %s410_s2 = inlined_call_operand.vmem [shape: f32[1,128], index: 2, kind: input, shape index: {}]   ;;  %s411_s3 = inlined_call_operand.hbm [shape: bf16[32,128], index: 3, kind: output, shape index: {}]  }
   0x1   :  { %9 = vsyncpa [#allocation7], 0 }
   0x2   :  { %10 = vsyncpa [#allocation5], 0  ;;  %s15_s14 = sshll.u32 %s408_s0, 4  ;;  %s362_s15 = smov [#allocation3]   ;;  %s16_s14 = int_to_ptr.hbm [resolvable:$true] %s15_s14 }
   0x3   :  { %s17_s16 = sshll.u32 %s362_s15, 4  ;;  %s28_s19 = sshll.u32 %s409_s1, 4  ;;  %s18_s16 = int_to_ptr.vmem [resolvable:$true] %s17_s16  ;;  %s29_s19 = int_to_ptr.hbm [resolvable:$true] %s28_s19 }
   0x4   :  { %s363_s20 = smov 64   ;;  %s364_s21 = smov 4  }
   0x5   :  { %23 = dma.hbm_to_vmem [thread:$0]  %s16_s14, 256, %s18_s16, [#allocation4], %s363_s20, %s363_s20, %s364_s21  }
   0x6   :  { %s365_s22 = smov [#allocation6]  }
   0x7   :  { %s30_s23 = sshll.u32 %s365_s22, 4  ;;  %s31_s23 = int_to_ptr.vmem [resolvable:$true] %s30_s23 }
   0x8   :  { %36 = dma.hbm_to_vmem [thread:$0]  %s29_s19, 1024, %s31_s23, [#allocation7], %s363_s20, %s363_s20, %s364_s21  }
   0x9   :  { %356 = dma.done.wait [#allocation4], 256  }
   0xa   :  { %357 = vsyncadd [#allocation4], 4294967040 }
   0xb   :  { %358 = dma.done.wait [#allocation7], 1024  }
   0xc   :  { %359 = vsyncadd [#allocation7], 4294966272  ;;  %v258_v0 = vld [vmem:[#allocation6 + $0x38] sm:$0xff]  ;;  %v257_v1 = vld [vmem:[#allocation6 + $0x30] sm:$0xff]  ;;  %s366_s24 = smov [#allocation8]   ;;  %s195_s28 = sshll.u32 %s411_s3, 4  ;;  %s196_s28 = int_to_ptr.hbm [resolvable:$true] %s195_s28 }
   0xd   :  { %139 = vmatpush.bf16.msra.mxu0 %v258_v0  ;;  %270 = vmatpush.bf16.msra.mxu1 %v258_v0  ;;  %v256_v2 = vld [vmem:[#allocation6 + $0x28] sm:$0xff]  ;;  %v255_v3 = vld [vmem:[#allocation6 + $0x20] sm:$0xff]  ;;  %v254_v4 = vld [vmem:[#allocation6 + $0x18] sm:$0xff]  ;;  %s193_s25 = sshll.u32 %s366_s24, 4  ;;  %s194_s25 = int_to_ptr.vmem [resolvable:$true] %s193_s25 }
   0xe   :  { %v253_v5 = vld [vmem:[#allocation6 + $0x10] sm:$0xff]  ;;  %v252_v6 = vld [vmem:[#allocation6 + $0x8] sm:$0xff]  ;;  %v251_v7 = vld [vmem:[#allocation6] sm:$0xff] }
   0xf   :  { %v249_v8 = vld [vmem:[#allocation3] sm:$0xff]  ;;  %v250_v9 = vld [vmem:[#allocation3 + $0x8] sm:$0xff] }
  0x10   :  { %v283_v12 = vld [vmem:[%s410_s2] ss:$0 sm:$0xff] }
  0x11   :  { %140 = vmatpush.bf16.msra.mxu0 %v257_v1  ;;  %271 = vmatpush.bf16.msra.mxu1 %v257_v1 }
  0x15   :  { %141 = vmatpush.bf16.msra.mxu0 %v256_v2  ;;  %272 = vmatpush.bf16.msra.mxu1 %v256_v2 }
  0x19   :  { %142 = vmatpush.bf16.msra.mxu0 %v255_v3  ;;  %273 = vmatpush.bf16.msra.mxu1 %v255_v3 }
  0x1d   :  { %143 = vmatpush.bf16.msra.mxu0 %v254_v4  ;;  %274 = vmatpush.bf16.msra.mxu1 %v254_v4 }
  0x21   :  { %144 = vmatpush.bf16.msra.mxu0 %v253_v5  ;;  %275 = vmatpush.bf16.msra.mxu1 %v253_v5 }
  0x25   :  { %145 = vmatpush.bf16.msra.mxu0 %v252_v6  ;;  %276 = vmatpush.bf16.msra.mxu1 %v252_v6 }
  0x29   :  { %146 = vmatpush.bf16.msra.mxu0 %v251_v7  ;;  %277 = vmatpush.bf16.msra.mxu1 %v251_v7 }
  0x2c   :  { %147 = vmatmul.bf16.vlgmr.msra.gmra.mxu0 %v249_v8  ;;  %152 = vmatmul.bf16.vlgmr.msra.gmra.mxu1 %v250_v9 }
  0xa9   :  { %v148_v10 = vpop.f32.mrf.mxu0  ;;  %v153_v11 = vpop.f32.mrf.mxu1 }
  0xaa   :  { %v177_v15 = vadd.f32 %v283_v12, %v148_v10  ;;  %v179_v16 = vadd.f32 %v283_v12, %v153_v11 }
  0xb1   :  { %v150_v13 = vpop.f32.mrf.mxu0  ;;  %v155_v14 = vpop.f32.mrf.mxu1 }
  0xb2   :  { %v178_v17 = vadd.f32 %v283_v12, %v150_v13  ;;  %v180_v18 = vadd.f32 %v283_v12, %v155_v14 }
  0xb4   :  { %v262_v19 = vpack.c.bf16 %v178_v17, %v177_v15  ;;  %v267_v20 = vpack.c.bf16 %v180_v18, %v179_v16 }
  0xb6   :  { %263 = vst [vmem:[#allocation8] sm:$0xff] %v262_v19  }
  0xb7   :  { %269 = vst [vmem:[#allocation8 + $0x8] sm:$0xff] %v267_v20  }
  0xb8   :  { %201 = dma.vmem_to_hbm [thread:$0]  %s194_s25, 256, %s196_s28, [#allocation5], %s363_s20, %s363_s20, %s364_s21  }
  0xb9   :  { %360 = dma.done.wait [#allocation5], 256  }
  0xba   :  { %361 = vsyncadd [#allocation5], 4294967040 }
  0xbb   :  { %206 = vsyncpa [#allocation4], 1 }
  0xbc   :  { %207 = vsyncpa [#allocation7], 1 }
  0xbd   :  { %208 = vsyncpa [#allocation5], 1 }

</bundles_post_ra>
